<compile_context>
chip_gen: v5e
topology: v5e:2x2
jax: 0.10.0
libtpu: 0.0.40
codegen_flags: <defaults>
</compile_context>

<pallas_src>
import functools
import math

import jax
import jax.numpy as jnp
from jax.experimental import pallas as pl
from jax.experimental.pallas import tpu as pltpu


# ----------------------------------------------------------------------------
# Helpers
# ----------------------------------------------------------------------------
@functools.lru_cache(maxsize=None)
def _vmem_limit_bytes():
    """Scoped-VMEM cap derived per chip generation (leave headroom for Mosaic
    internal scratch + double-buffered streams): v7x 64MiB -> 48MiB,
    v5e/v6e 128MiB -> 96MiB."""
    cap = 64 * 1024 * 1024
    try:
        cap = int(pltpu.get_tpu_info().vmem_capacity_bytes)
    except Exception:
        pass
    return int(min(cap * 3 // 4, 96 * 1024 * 1024))


def _cparams(dims):
    return pltpu.CompilerParams(dimension_semantics=dims,
                                vmem_limit_bytes=_vmem_limit_bytes())


def _pick_tile(dim, target, align):
    """Largest multiple of `align` that divides `dim` and is <= target (else full dim)."""
    if dim <= target:
        return dim
    t = (target // align) * align
    while t >= align:
        if dim % t == 0:
            return t
        t -= align
    return dim


def _pick_tile_m(M, target, align=8):
    """Like _pick_tile, but prefer >= 2 grid steps on the (parallel) M axis so
    both v7x TensorCores get work when M allows it."""
    tm = _pick_tile(M, target, align)
    if M // tm < 2:
        half = _pick_tile(M, max(align, M // 2), align)
        if M // half >= 2:
            tm = half
    return tm


def _to_bf16(x):
    return x if x.dtype == jnp.bfloat16 else x.astype(jnp.bfloat16)


def _gelu_tanh(x):
    # tanh-approximate GELU: transcendental lands on the EUP slot.
    # TODO(synk): HF "gelu" is exact erf; tanh approx differs by ~1e-3 max.
    c = math.sqrt(2.0 / math.pi)
    return 0.5 * x * (1.0 + jnp.tanh(c * (x + 0.044715 * x * x * x)))


def _layernorm(y, gamma, beta, eps):
    mu = jnp.mean(y, axis=-1, keepdims=True)
    var = jnp.mean(jnp.square(y - mu), axis=-1, keepdims=True)
    return (y - mu) * jax.lax.rsqrt(var + eps) * gamma + beta


# ----------------------------------------------------------------------------
# Tiled linear:  y = x @ w + b     (bf16 MXU operands, f32 accumulator)
# ----------------------------------------------------------------------------
def _linear_kernel(x_ref, w_ref, b_ref, o_ref, acc_ref):
    k = pl.program_id(2)

    @pl.when(k == 0)
    def _():
        acc_ref[...] = jnp.zeros_like(acc_ref)

    acc_ref[...] += jnp.dot(_to_bf16(x_ref[...]), w_ref[...],
                            preferred_element_type=jnp.float32)

    @pl.when(k == pl.num_programs(2) - 1)
    def _():
        o_ref[...] = (acc_ref[...] + b_ref[...]).astype(o_ref.dtype)


def pallas_linear(x, w, b, out_dtype=jnp.float32, tm=256, tn=512, tk=512):
    """x:(M,K), w:(K,N) bf16, b:(N,) f32 -> (M,N) out_dtype."""
    M, K = x.shape
    N = w.shape[1]
    tm = _pick_tile(M, tm, 8)
    tn = _pick_tile(N, tn, 128)
    tk = _pick_tile(K, tk, 128)
    grid = (M // tm, N // tn, K // tk)
    return pl.pallas_call(
        _linear_kernel,
        grid=grid,
        out_shape=jax.ShapeDtypeStruct((M, N), out_dtype),
        in_specs=[
            pl.BlockSpec((tm, tk), lambda i, j, k: (i, k)),
            pl.BlockSpec((tk, tn), lambda i, j, k: (k, j)),
            pl.BlockSpec((1, tn), lambda i, j, k: (0, j)),
        ],
        out_specs=pl.BlockSpec((tm, tn), lambda i, j, k: (i, j)),
        scratch_shapes=[pltpu.VMEM((tm, tn), jnp.float32)],
        compiler_params=_cparams(("parallel", "parallel", "arbitrary")),
    )(x, w, b.reshape(1, N))


# ----------------------------------------------------------------------------
# Tiled linear fused with bias + residual + LayerNorm epilogue
#   out = LayerNorm(x @ w + b + residual)
# (N kept whole per output row tile so the LN row statistics are local.)
# ----------------------------------------------------------------------------
def _linear_res_ln_kernel(x_ref, w_ref, b_ref, r_ref, g_ref, beta_ref,
                          o_ref, acc_ref, *, eps):
    k = pl.program_id(1)

    @pl.when(k == 0)
    def _():
        acc_ref[...] = jnp.zeros_like(acc_ref)

    acc_ref[...] += jnp.dot(_to_bf16(x_ref[...]), w_ref[...],
                            preferred_element_type=jnp.float32)

    @pl.when(k == pl.num_programs(1) - 1)
    def _():
        y = acc_ref[...] + b_ref[...] + r_ref[...].astype(jnp.float32)
        o_ref[...] = _layernorm(y, g_ref[...], beta_ref[...], eps).astype(o_ref.dtype)


def pallas_linear_residual_ln(x, w, b, residual, gamma, beta,
                              eps=1e-12, tm=256, tk=512):
    """LayerNorm(x @ w + b + residual).  x:(M,K), w:(K,N), residual:(M,N)."""
    M, K = x.shape
    N = w.shape[1]
    tm = _pick_tile_m(M, tm, 8)   # >= 2 parallel M steps when possible (v7x)
    tk = _pick_tile(K, tk, 128)
    grid = (M // tm, K // tk)
    return pl.pallas_call(
        functools.partial(_linear_res_ln_kernel, eps=eps),
        grid=grid,
        out_shape=jax.ShapeDtypeStruct((M, N), jnp.float32),
        in_specs=[
            pl.BlockSpec((tm, tk), lambda i, k: (i, k)),
            pl.BlockSpec((tk, N), lambda i, k: (k, 0)),
            pl.BlockSpec((1, N), lambda i, k: (0, 0)),
            pl.BlockSpec((tm, N), lambda i, k: (i, 0)),
            pl.BlockSpec((1, N), lambda i, k: (0, 0)),
            pl.BlockSpec((1, N), lambda i, k: (0, 0)),
        ],
        out_specs=pl.BlockSpec((tm, N), lambda i, k: (i, 0)),
        scratch_shapes=[pltpu.VMEM((tm, N), jnp.float32)],
        compiler_params=_cparams(("parallel", "arbitrary")),
    )(x, w, b.reshape(1, N), residual, gamma.reshape(1, N), beta.reshape(1, N))


# ----------------------------------------------------------------------------
# Fused FFN block:  out = LayerNorm(gelu(x @ w1 + b1) @ w2 + b2 + x)
# Grid (M/tm, I/ti); the (tm, ti) GELU tile is consumed in-register, so the
# (M, I) intermediate never round-trips through HBM.
# ----------------------------------------------------------------------------
def _ffn_kernel(x_ref, w1_ref, b1_ref, w2_ref, b2_ref, g_ref, beta_ref,
                o_ref, acc_ref, *, eps):
    j = pl.program_id(1)

    @pl.when(j == 0)
    def _():
        acc_ref[...] = jnp.zeros_like(acc_ref)

    xb = _to_bf16(x_ref[...])
    h1 = jnp.dot(xb, w1_ref[...], preferred_element_type=jnp.float32) + b1_ref[...]
    h1 = _gelu_tanh(h1)
    acc_ref[...] += jnp.dot(h1.astype(jnp.bfloat16), w2_ref[...],
                            preferred_element_type=jnp.float32)

    @pl.when(j == pl.num_programs(1) - 1)
    def _():
        y = acc_ref[...] + b2_ref[...] + x_ref[...].astype(jnp.float32)
        o_ref[...] = _layernorm(y, g_ref[...], beta_ref[...], eps).astype(o_ref.dtype)


def pallas_ffn_residual_ln(x, w1, b1, w2, b2, gamma, beta,
                           eps=1e-12, tm=256, ti=512):
    """LayerNorm(gelu(x @ w1 + b1) @ w2 + b2 + x).  x:(M,H), w1:(H,I), w2:(I,H)."""
    M, H = x.shape
    I = w1.shape[1]
    tm = _pick_tile_m(M, tm, 8)   # >= 2 parallel M steps when possible (v7x)
    ti = _pick_tile(I, ti, 128)
    grid = (M // tm, I // ti)
    return pl.pallas_call(
        functools.partial(_ffn_kernel, eps=eps),
        grid=grid,
        out_shape=jax.ShapeDtypeStruct((M, H), jnp.float32),
        in_specs=[
            pl.BlockSpec((tm, H), lambda i, j: (i, 0)),   # x (resident across j)
            pl.BlockSpec((H, ti), lambda i, j: (0, j)),   # w1 column block
            pl.BlockSpec((1, ti), lambda i, j: (0, j)),   # b1 block
            pl.BlockSpec((ti, H), lambda i, j: (j, 0)),   # w2 row block
            pl.BlockSpec((1, H), lambda i, j: (0, 0)),    # b2
            pl.BlockSpec((1, H), lambda i, j: (0, 0)),    # gamma
            pl.BlockSpec((1, H), lambda i, j: (0, 0)),    # beta
        ],
        out_specs=pl.BlockSpec((tm, H), lambda i, j: (i, 0)),
        scratch_shapes=[pltpu.VMEM((tm, H), jnp.float32)],
        compiler_params=_cparams(("parallel", "arbitrary")),
    )(x, w1, b1.reshape(1, I), w2, b2.reshape(1, H),
      gamma.reshape(1, H), beta.reshape(1, H))


# ----------------------------------------------------------------------------
# Plain LayerNorm over rows (embedding LN)
# ----------------------------------------------------------------------------
def _ln_kernel(x_ref, g_ref, b_ref, o_ref, *, eps):
    y = x_ref[...].astype(jnp.float32)
    o_ref[...] = _layernorm(y, g_ref[...], b_ref[...], eps).astype(o_ref.dtype)


def pallas_layernorm(x, gamma, beta, eps=1e-12, tm=512):
    M, H = x.shape
    tm = _pick_tile_m(M, tm, 8)
    return pl.pallas_call(
        functools.partial(_ln_kernel, eps=eps),
        grid=(M // tm,),
        out_shape=jax.ShapeDtypeStruct((M, H), jnp.float32),
        in_specs=[
            pl.BlockSpec((tm, H), lambda i: (i, 0)),
            pl.BlockSpec((1, H), lambda i: (0, 0)),
            pl.BlockSpec((1, H), lambda i: (0, 0)),
        ],
        out_specs=pl.BlockSpec((tm, H), lambda i: (i, 0)),
        compiler_params=_cparams(("parallel",)),
    )(x, gamma.reshape(1, H), beta.reshape(1, H))


# ----------------------------------------------------------------------------
# Multi-head self attention over the fused QKV tensor (B, S, 3H).
# One contiguous (1, S, 3H) block per batch is DMA'd; heads are sliced
# in-kernel with lane-aligned static slices (no per-head strided DMAs, no
# split/merge-head transposes in XLA).
# ----------------------------------------------------------------------------
def _attn_kernel(qkv_ref, m_ref, o_ref, *, n_heads, hidden, scale):
    d = hidden // n_heads
    mask = m_ref[0]                                        # (1, S) additive, f32
    # TODO(synk): add KV-axis (flash-style) tiling before scaling to S >= 1024;
    # the full (S,S) score matrix per head is fine at toy/short sequences.
    for h in range(n_heads):
        q = qkv_ref[0, :, h * d:(h + 1) * d]               # (S, d) bf16
        k = qkv_ref[0, :, hidden + h * d:hidden + (h + 1) * d]
        v = qkv_ref[0, :, 2 * hidden + h * d:2 * hidden + (h + 1) * d]
        s = jax.lax.dot_general(
            q, k, (((1,), (1,)), ((), ())),
            preferred_element_type=jnp.float32) * scale + mask
        s = s - jnp.max(s, axis=-1, keepdims=True)
        p = jnp.exp(s)
        p = p * pl.reciprocal(jnp.sum(p, axis=-1, keepdims=True), approx=True)
        ctx = jnp.dot(p.astype(jnp.bfloat16), v, preferred_element_type=jnp.float32)
        o_ref[0, :, h * d:(h + 1) * d] = ctx.astype(o_ref.dtype)


def pallas_attention_fused_qkv(qkv, ext_mask, n_heads, hidden):
    """qkv:(B,S,3H) bf16 (Q|K|V concatenated), ext_mask:(B,1,S) additive -> (B,S,H) bf16."""
    B, S, _ = qkv.shape
    H = hidden
    d = H // n_heads
    scale = 1.0 / math.sqrt(d)
    return pl.pallas_call(
        functools.partial(_attn_kernel, n_heads=n_heads, hidden=H, scale=scale),
        grid=(B,),
        out_shape=jax.ShapeDtypeStruct((B, S, H), jnp.bfloat16),
        in_specs=[
            pl.BlockSpec((1, S, 3 * H), lambda b: (b, 0, 0)),   # all heads, one DMA
            pl.BlockSpec((1, 1, S), lambda b: (b, 0, 0)),       # additive mask
        ],
        out_specs=pl.BlockSpec((1, S, H), lambda b: (b, 0, 0)),
        compiler_params=_cparams(("parallel",)),
    )(qkv, ext_mask)


# ----------------------------------------------------------------------------
# Parameter initialization (deterministic, synthetic). Matmul weights in bf16.
# ----------------------------------------------------------------------------
def init_params(key, cfg):
    H, I, Dv = cfg["hidden"], cfg["intermediate"], cfg["visual_dim"]
    keys = iter(jax.random.split(key, 128))

    def wf32(shape):
        return 0.02 * jax.random.normal(next(keys), shape, jnp.float32)

    def wbf16(shape):
        return wf32(shape).astype(jnp.bfloat16)

    def zeros(shape):
        return jnp.zeros(shape, jnp.float32)

    def ones(shape):
        return jnp.ones(shape, jnp.float32)

    params = {
        "word_emb": wf32((cfg["vocab"], H)),
        "pos_emb": wf32((cfg["max_pos"], H)),
        "tok_type_emb": wf32((cfg["type_vocab"], H)),
        "vis_proj_w": wbf16((Dv, H)), "vis_proj_b": zeros((H,)),
        "vis_tok_type_emb": wf32((cfg["type_vocab"], H)),
        "vis_pos_emb": wf32((cfg["max_pos"], H)),
        "emb_ln_g": ones((H,)), "emb_ln_b": zeros((H,)),
        # classifier head runs in plain XLA (num_class=10 is not lane-dense)
        "cls_w": wf32((H, cfg["num_class"])), "cls_b": zeros((cfg["num_class"],)),
        "layers": [],
    }
    for _ in range(cfg["layers"]):
        params["layers"].append({
            # fused Q|K|V projection: (H, 3H)
            "qkv_w": wbf16((H, 3 * H)), "qkv_b": zeros((3 * H,)),
            "ao_w": wbf16((H, H)), "ao_b": zeros((H,)),
            "ln1_g": ones((H,)), "ln1_b": zeros((H,)),
            "i_w": wbf16((H, I)), "i_b": zeros((I,)),
            "o_w": wbf16((I, H)), "o_b": zeros((H,)),
            "ln2_g": ones((H,)), "ln2_b": zeros((H,)),
        })
    return params


# ----------------------------------------------------------------------------
# Forward pass (VisualBertClassification.forward, eval mode)
# ----------------------------------------------------------------------------
def visual_bert_classification(params, cfg, input_ids, token_type_ids,
                               attention_mask, visual_embeds):
    B, S_t = input_ids.shape
    S_v = visual_embeds.shape[1]
    Dv = visual_embeds.shape[-1]
    H = cfg["hidden"]
    heads = cfg["heads"]

    # as in the torch forward(): visual token types = ones, visual mask = ones
    visual_token_type_ids = jnp.ones((B, S_v), dtype=jnp.int32)
    visual_attention_mask = jnp.ones((B, S_v), dtype=jnp.float32)

    # ---------------- embeddings ----------------
    word_e = jnp.take(params["word_emb"], input_ids, axis=0)            # (B,S_t,H)
    pos_e = params["pos_emb"][:S_t][None, :, :]                         # (1,S_t,H)
    tok_e = jnp.take(params["tok_type_emb"], token_type_ids, axis=0)    # (B,S_t,H)
    text_emb = word_e + pos_e + tok_e

    vproj = pallas_linear(visual_embeds.reshape(B * S_v, Dv),
                          params["vis_proj_w"], params["vis_proj_b"]
                          ).reshape(B, S_v, H)
    vis_tok_e = jnp.take(params["vis_tok_type_emb"], visual_token_type_ids, axis=0)
    vis_pos_e = params["vis_pos_emb"][0][None, None, :]                 # position ids = 0
    vis_emb = vproj + vis_tok_e + vis_pos_e

    emb = jnp.concatenate([text_emb, vis_emb], axis=1)                  # (B,S,H)
    S = S_t + S_v
    h = pallas_layernorm(emb.reshape(B * S, H),
                         params["emb_ln_g"], params["emb_ln_b"]).reshape(B, S, H)
    # embedding dropout: identity in eval mode

    # ---------------- extended attention mask ----------------
    full_mask = jnp.concatenate(
        [attention_mask.astype(jnp.float32), visual_attention_mask], axis=1)  # (B,S)
    ext_mask = (1.0 - full_mask)[:, None, :] * jnp.finfo(jnp.float32).min     # (B,1,S)

    # ---------------- encoder layers ----------------
    for lyr in params["layers"]:
        x2 = h.reshape(B * S, H)                                         # f32 residual stream
        # fused QKV projection (one matmul, bf16 output read once by attention)
        qkv = pallas_linear(x2, lyr["qkv_w"], lyr["qkv_b"],
                            out_dtype=jnp.bfloat16).reshape(B, S, 3 * H)
        ctx = pallas_attention_fused_qkv(qkv, ext_mask, heads, H).reshape(B * S, H)
        # attention output projection fused with residual + LayerNorm
        x1 = pallas_linear_residual_ln(ctx, lyr["ao_w"], lyr["ao_b"], x2,
                                       lyr["ln1_g"], lyr["ln1_b"])
        # fused GELU-FFN + residual + LayerNorm (no (M,I) HBM round-trip)
        h = pallas_ffn_residual_ln(x1, lyr["i_w"], lyr["i_b"],
                                   lyr["o_w"], lyr["o_b"],
                                   lyr["ln2_g"], lyr["ln2_b"]).reshape(B, S, H)

    sequence_output = h

    # ---------------- VQA head ----------------
    # index_to_gather = attention_mask.sum(1) - 2; torch.gather along seq axis
    # TODO(synk): negative / out-of-range indices are clamped by JAX (torch.gather errors).
    idx = jnp.sum(attention_mask.astype(jnp.float32), axis=1).astype(jnp.int32) - 2
    pooled = sequence_output[jnp.arange(B), idx]                         # (B,H)
    # dropout: identity in eval mode
    # tiny (B,H)x(H,num_class) classifier: plain XLA (avoids a 10/128-lane
    # masked-store Pallas launch)
    logits = jnp.dot(pooled, params["cls_w"]) + params["cls_b"]          # (B,num_class)
    return logits.reshape(-1, cfg["num_class"])


# ----------------------------------------------------------------------------
if __name__ == "__main__":
    # small but lane-aligned toy config (per-head dim d = 256/2 = 128)
    cfg = dict(vocab=100, hidden=256, heads=2, layers=2, intermediate=512,
               visual_dim=128, type_vocab=2, max_pos=64, num_class=10)

    key = jax.random.PRNGKey(0)
    pkey, ikey, vkey = jax.random.split(key, 3)
    params = init_params(pkey, cfg)

    B, S_text, S_vis = 2, 8, 4
    input_ids = jax.random.randint(ikey, (B, S_text), 0, cfg["vocab"], dtype=jnp.int32)
    token_type_ids = jnp.zeros((B, S_text), jnp.int32)
    attention_mask = jnp.ones((B, S_text), jnp.float32)
    visual_embeds = jax.random.normal(vkey, (B, S_vis, cfg["visual_dim"]), jnp.float32)

    logits = visual_bert_classification(
        params, cfg, input_ids, token_type_ids, attention_mask, visual_embeds)
    logits = jax.block_until_ready(logits)
    assert logits.shape == (B, cfg["num_class"])
    assert bool(jnp.all(jnp.isfinite(logits)))
    print("KERNEL_OK")
</pallas_src>

<mosaic_0001>
module attributes {stable_mosaic.version = 11 : i64} {
  func.func @_linear_kernel(%arg0: i32, %arg1: i32, %arg2: i32, %arg3: memref<8x128xf32, #tpu.memory_space<vmem>>, %arg4: memref<128x256xbf16, #tpu.memory_space<vmem>>, %arg5: memref<1x256xf32, #tpu.memory_space<vmem>>, %arg6: memref<8x256xf32, #tpu.memory_space<vmem>>, %arg7: memref<8x256xf32, #tpu.memory_space<vmem>>) attributes {dimension_semantics = [#tpu.dimension_semantics<parallel>, #tpu.dimension_semantics<parallel>, #tpu.dimension_semantics<arbitrary>], iteration_bounds = array<i64: 1, 1, 1>, scalar_prefetch = 0 : i64, scratch_operands = 1 : i64, tpu.core_type = #tpu.core_type<tc>, window_params = [{transform_indices = @transform_0, window_bounds = array<i64: 8, 128>}, {transform_indices = @transform_1, window_bounds = array<i64: 128, 256>}, {transform_indices = @transform_2, window_bounds = array<i64: 1, 256>}, {transform_indices = @transform_3, window_bounds = array<i64: 8, 256>}]} {
    %c0_i32 = arith.constant 0 : i32
    %0 = arith.cmpi eq, %arg2, %c0_i32 : i32
    %1 = arith.extui %0 : i1 to i32
    %c0_i32_0 = arith.constant 0 : i32
    %2 = arith.cmpi ne, %1, %c0_i32_0 : i32
    scf.if %2 {
      %cst_10 = arith.constant 0.000000e+00 : f32
      %13 = vector.broadcast %cst_10 : f32 to vector<8x256xf32>
      %c0_11 = arith.constant 0 : index
      %c0_12 = arith.constant 0 : index
      %14 = vector.load %arg7[%c0_11, %c0_12] : memref<8x256xf32, #tpu.memory_space<vmem>>, vector<8x256xf32>
      tpu.vector_store %arg7[%c0_11, %c0_12], %13 {strides = array<i32>} : memref<8x256xf32, #tpu.memory_space<vmem>>, vector<8x256xf32>,
    } else {
    }
    %c0 = arith.constant 0 : index
    %c0_1 = arith.constant 0 : index
    %3 = vector.load %arg7[%c0, %c0_1] : memref<8x256xf32, #tpu.memory_space<vmem>>, vector<8x256xf32>
    %c0_2 = arith.constant 0 : index
    %c0_3 = arith.constant 0 : index
    %4 = vector.load %arg3[%c0_2, %c0_3] : memref<8x128xf32, #tpu.memory_space<vmem>>, vector<8x128xf32>
    %5 = arith.truncf %4 : vector<8x128xf32> to vector<8x128xbf16>
    %c0_4 = arith.constant 0 : index
    %c0_5 = arith.constant 0 : index
    %6 = vector.load %arg4[%c0_4, %c0_5] : memref<128x256xbf16, #tpu.memory_space<vmem>>, vector<128x256xbf16>
    %cst = arith.constant dense<0.000000e+00> : vector<8x256xf32>
    %7 = tpu.matmul %5, %6, %cst {dimension_numbers = #tpu.dot_dimension_numbers<[1], [0], [0], [1], [0, 0, 1, 1], [], []>} : vector<8x128xbf16>, vector<128x256xbf16>, vector<8x256xf32> -> vector<8x256xf32>
    %8 = arith.addf %3, %7 : vector<8x256xf32>
    %c0_6 = arith.constant 0 : index
    %c0_7 = arith.constant 0 : index
    %9 = vector.load %arg7[%c0_6, %c0_7] : memref<8x256xf32, #tpu.memory_space<vmem>>, vector<8x256xf32>
    tpu.vector_store %arg7[%c0_6, %c0_7], %8 {strides = array<i32>} : memref<8x256xf32, #tpu.memory_space<vmem>>, vector<8x256xf32>,
    %c0_i32_8 = arith.constant 0 : i32
    %10 = arith.cmpi eq, %arg2, %c0_i32_8 : i32
    %11 = arith.extui %10 : i1 to i32
    %c0_i32_9 = arith.constant 0 : i32
    %12 = arith.cmpi ne, %11, %c0_i32_9 : i32
    scf.if %12 {
      %c0_10 = arith.constant 0 : index
      %c0_11 = arith.constant 0 : index
      %13 = vector.load %arg7[%c0_10, %c0_11] : memref<8x256xf32, #tpu.memory_space<vmem>>, vector<8x256xf32>
      %c0_12 = arith.constant 0 : index
      %c0_13 = arith.constant 0 : index
      %14 = vector.load %arg5[%c0_12, %c0_13] : memref<1x256xf32, #tpu.memory_space<vmem>>, vector<1x256xf32>
      %15 = vector.broadcast %14 : vector<1x256xf32> to vector<8x256xf32>
      %16 = arith.addf %13, %15 : vector<8x256xf32>
      %c0_14 = arith.constant 0 : index
      %c0_15 = arith.constant 0 : index
      %17 = vector.load %arg6[%c0_14, %c0_15] : memref<8x256xf32, #tpu.memory_space<vmem>>, vector<8x256xf32>
      tpu.vector_store %arg6[%c0_14, %c0_15], %16 {strides = array<i32>} : memref<8x256xf32, #tpu.memory_space<vmem>>, vector<8x256xf32>,
    } else {
    }
    return
  }
  func.func @transform_0(%arg0: i32, %arg1: i32, %arg2: i32) -> (i32, i32) {
    %c0_i32 = arith.constant 0 : i32
    return %arg0, %arg2 : i32, i32
  }
  func.func @transform_1(%arg0: i32, %arg1: i32, %arg2: i32) -> (i32, i32) {
    %c0_i32 = arith.constant 0 : i32
    return %arg2, %arg1 : i32, i32
  }
  func.func @transform_2(%arg0: i32, %arg1: i32, %arg2: i32) -> (i32, i32) {
    %c0_i32 = arith.constant 0 : i32
    %c0_i32_0 = arith.constant 0 : i32
    return %c0_i32, %arg1 : i32, i32
  }
  func.func @transform_3(%arg0: i32, %arg1: i32, %arg2: i32) -> (i32, i32) {
    %c0_i32 = arith.constant 0 : i32
    return %arg0, %arg1 : i32, i32
  }
}

</mosaic_0001>

<bundles_post_ra>
// kernel: tpu_custom_call.1
= control target key start
LH: loop header
LB: loop body
LE: loop exit
PB: predicated region body
PF: predicated region fallthrough
CT: control target
= control target key end

     0   :  { %8 = vsyncpa [#allocation4], 0  ;;  %s453_s0 = inlined_call_operand.hbm [shape: f32[8,128], index: 0, kind: input, shape index: {}]   ;;  %s454_s1 = inlined_call_operand.hbm [shape: bf16[128,256], index: 1, kind: input, shape index: {}]   ;;  %s455_s2 = inlined_call_operand.hbm [shape: f32[1,256], index: 2, kind: input, shape index: {}]   ;;  %s456_s3 = inlined_call_operand.hbm [shape: f32[8,256], index: 3, kind: output, shape index: {}]  }
   0x1   :  { %9 = vsyncpa [#allocation7], 0  ;;  %s26_s14 = sshll.u32 %s454_s1, 4  ;;  %s27_s14 = int_to_ptr.hbm [resolvable:$true] %s26_s14 }
   0x2   :  { %10 = vsyncpa [#allocation5], 0  ;;  %s415_s15 = smov [#allocation6]   ;;  %s16_s19 = sshll.u32 %s453_s0, 4  ;;  %s17_s19 = int_to_ptr.hbm [resolvable:$true] %s16_s19 }
   0x3   :  { %s28_s16 = sshll.u32 %s415_s15, 4  ;;  %s416_s20 = smov 128   ;;  %s29_s16 = int_to_ptr.vmem [resolvable:$true] %s28_s16 }
   0x4   :  { %s417_s21 = smov 8   ;;  %s418_s22 = smov [#allocation3]  }
   0x5   :  { %34 = dma.hbm_to_vmem [thread:$0]  %s27_s14, 2048, %s29_s16, [#allocation7], %s416_s20, %s416_s20, %s417_s21  }
   0x6   :  { %s18_s23 = sshll.u32 %s418_s22, 4  ;;  %s40_s26 = sshll.u32 %s455_s2, 4  ;;  %s19_s23 = int_to_ptr.vmem [resolvable:$true] %s18_s23  ;;  %s41_s26 = int_to_ptr.hbm [resolvable:$true] %s40_s26 }
   0x7   :  { %21 = dma.hbm_to_vmem [thread:$0]  %s17_s19, 128, %s19_s23, [#allocation4]  }
   0x8   :  { %s419_s1 = smov [#allocation8]  }
   0x9   :  { %s42_s27 = sshll.u32 %s419_s1, 4  ;;  %s43_s27 = int_to_ptr.vmem [resolvable:$true] %s42_s27 }
   0xa   :  { %45 = dma.hbm_to_vmem [thread:$0]  %s41_s26, 32, %s43_s27, [#allocation7]  }
   0xb   :  { %409 = dma.done.wait [#allocation4], 128  }
   0xc   :  { %410 = vsyncadd [#allocation4], 4294967168 }
   0xd   :  { %411 = dma.done.wait [#allocation7], 2080  }
   0xe   :  { %412 = vsyncadd [#allocation7], 4294965216  ;;  %v285_v0 = vld [vmem:[#allocation6 + $0x70] sm:$0xf]  ;;  %v306_v1 = vld [vmem:[#allocation6 + $0x74] sm:$0xf0] }
   0xf   :  { %v305_v2 = vld [vmem:[#allocation6 + $0x74] sm:$0xf]  ;;  %v286_v3 = vor.u32 %v306_v1, %v285_v0  ;;  %v287_v4 = vld [vmem:[#allocation6 + $0x78] sm:$0xf0]  ;;  %v277_v5 = vld [vmem:[#allocation6 + $0x60] sm:$0xf] }
  0x10   :  { %v304_v6 = vld [vmem:[#allocation6 + $0x64] sm:$0xf0]  ;;  %v290_v7 = vor.u32 %v305_v2, %v287_v4  ;;  %v303_v8 = vld [vmem:[#allocation6 + $0x64] sm:$0xf]  ;;  %v279_v9 = vld [vmem:[#allocation6 + $0x68] sm:$0xf0] }
  0x11   :  { %164 = vmatpush.bf16.msra.mxu0 %v286_v3  ;;  %v278_v10 = vor.u32 %v304_v6, %v277_v5  ;;  %v282_v11 = vor.u32 %v303_v8, %v279_v9  ;;  %v269_v12 = vld [vmem:[#allocation6 + $0x50] sm:$0xf]  ;;  %v302_v13 = vld [vmem:[#allocation6 + $0x54] sm:$0xf0]  ;;  %v301_v14 = vld [vmem:[#allocation6 + $0x54] sm:$0xf] }
  0x12   :  { %177 = vmatpush.bf16.msra.mxu1 %v290_v7  ;;  %v271_v15 = vld [vmem:[#allocation6 + $0x58] sm:$0xf0]  ;;  %v270_v16 = vor.u32 %v302_v13, %v269_v12  ;;  %v261_v18 = vld [vmem:[#allocation6 + $0x40] sm:$0xf]  ;;  %v300_v19 = vld [vmem:[#allocation6 + $0x44] sm:$0xf0] }
  0x13   :  { %v274_v17 = vor.u32 %v301_v14, %v271_v15  ;;  %v299_v20 = vld [vmem:[#allocation6 + $0x44] sm:$0xf]  ;;  %v263_v21 = vld [vmem:[#allocation6 + $0x48] sm:$0xf0]  ;;  %v262_v22 = vor.u32 %v300_v19, %v261_v18  ;;  %v253_v24 = vld [vmem:[#allocation6 + $0x30] sm:$0xf] }
  0x14   :  { %v266_v23 = vor.u32 %v299_v20, %v263_v21  ;;  %v298_v25 = vld [vmem:[#allocation6 + $0x34] sm:$0xf0]  ;;  %v297_v26 = vld [vmem:[#allocation6 + $0x34] sm:$0xf]  ;;  %v255_v27 = vld [vmem:[#allocation6 + $0x38] sm:$0xf0] }
  0x15   :  { %165 = vmatpush.bf16.msra.mxu0 %v278_v10  ;;  %v254_v28 = vor.u32 %v298_v25, %v253_v24  ;;  %v258_v29 = vor.u32 %v297_v26, %v255_v27  ;;  %v245_v30 = vld [vmem:[#allocation6 + $0x20] sm:$0xf]  ;;  %v296_v31 = vld [vmem:[#allocation6 + $0x24] sm:$0xf0]  ;;  %v295_v32 = vld [vmem:[#allocation6 + $0x24] sm:$0xf] }
  0x16   :  { %178 = vmatpush.bf16.msra.mxu1 %v282_v11  ;;  %v247_v33 = vld [vmem:[#allocation6 + $0x28] sm:$0xf0]  ;;  %v246_v34 = vor.u32 %v296_v31, %v245_v30  ;;  %v237_v36 = vld [vmem:[#allocation6 + $0x10] sm:$0xf]  ;;  %v294_v37 = vld [vmem:[#allocation6 + $0x14] sm:$0xf0] }
  0x17   :  { %v250_v35 = vor.u32 %v295_v32, %v247_v33  ;;  %v293_v38 = vld [vmem:[#allocation6 + $0x14] sm:$0xf]  ;;  %v239_v39 = vld [vmem:[#allocation6 + $0x18] sm:$0xf0]  ;;  %v238_v40 = vor.u32 %v294_v37, %v237_v36  ;;  %v229_v42 = vld [vmem:[#allocation6] sm:$0xf] }
  0x18   :  { %v242_v41 = vor.u32 %v293_v38, %v239_v39  ;;  %v292_v43 = vld [vmem:[#allocation6 + $0x4] sm:$0xf0]  ;;  %v291_v44 = vld [vmem:[#allocation6 + $0x4] sm:$0xf]  ;;  %v231_v45 = vld [vmem:[#allocation6 + $0x8] sm:$0xf0] }
  0x19   :  { %166 = vmatpush.bf16.msra.mxu0 %v270_v16  ;;  %v230_v46 = vor.u32 %v292_v43, %v229_v42  ;;  %v66_v47 = vld [vmem:[#allocation3] sm:$0xff]  ;;  %v234_v48 = vor.u32 %v291_v44, %v231_v45  ;;  %v199_v50 = vld [vmem:[#allocation8] sm:$0x3]  ;;  %s420_s0 = smov [#allocation9]   ;;  %s216_s30 = sshll.u32 %s456_s3, 4  ;;  %s217_s30 = int_to_ptr.hbm [resolvable:$true] %s216_s30 }
  0x1a   :  { %179 = vmatpush.bf16.msra.mxu1 %v274_v17  ;;  %v67_v49 = vpack.c.bf16 %v66_v47, %v66_v47  ;;  %v201_v51 = vperm.slane %v199_v50, 0  ;;  %v202_v52 = vperm.slane %v199_v50, 1  ;;  %s214_s2 = sshll.u32 %s420_s0, 4  ;;  %s215_s2 = int_to_ptr.vmem [resolvable:$true] %s214_s2 }
  0x1d   :  { %167 = vmatpush.bf16.msra.mxu0 %v262_v22 }
  0x1e   :  { %180 = vmatpush.bf16.msra.mxu1 %v266_v23 }
  0x21   :  { %168 = vmatpush.bf16.msra.mxu0 %v254_v28 }
  0x22   :  { %181 = vmatpush.bf16.msra.mxu1 %v258_v29 }
  0x25   :  { %169 = vmatpush.bf16.msra.mxu0 %v246_v34 }
  0x26   :  { %182 = vmatpush.bf16.msra.mxu1 %v250_v35 }
  0x29   :  { %170 = vmatpush.bf16.msra.mxu0 %v238_v40 }
  0x2a   :  { %183 = vmatpush.bf16.msra.mxu1 %v242_v41 }
  0x2d   :  { %171 = vmatpush.bf16.msra.mxu0 %v230_v46 }
  0x2e   :  { %184 = vmatpush.bf16.msra.mxu1 %v234_v48 }
  0x30   :  { %172 = vmatmul.bf16.vlgmr.msra.gmra.mxu0 %v67_v49 }
  0x31   :  { %185 = vmatmul.bf16.vlgmr.msra.gmra.mxu1 %v67_v49 }
  0xad   :  { %v173_v53 = vpop.f32.mrf.mxu0 }
  0xae   :  { %v205_v54 = vadd.f32 %v201_v51, %v173_v53  ;;  %v186_v55 = vpop.f32.mrf.mxu1 }
  0xaf   :  { %v206_v56 = vadd.f32 %v202_v52, %v186_v55 }
  0xb0   :  { %207 = vst [vmem:[#allocation9] sm:$0xff] %v205_v54 }
  0xb1   :  { %208 = vst [vmem:[#allocation9 + $0x8] sm:$0xff] %v206_v56 }
  0xb2   :  { %219 = dma.vmem_to_hbm [thread:$0]  %s215_s2, 256, %s217_s30, [#allocation5]  }
  0xb5   :  { %v175_v57 = vpop.f32.mrf.mxu0 }
  0xb6   :  { %v188_v58 = vpop.f32.mrf.mxu1 }
  0xb7   :  { %413 = dma.done.wait [#allocation5], 256  }
  0xb8   :  { %414 = vsyncadd [#allocation5], 4294967040 }
  0xb9   :  { %224 = vsyncpa [#allocation4], 1 }
  0xba   :  { %225 = vsyncpa [#allocation7], 1 }
  0xbb   :  { %226 = vsyncpa [#allocation5], 1 }

</bundles_post_ra>
